<compile_context>
chip_gen: v7x
topology: tpu7x:2x2x1
jax: 0.10.0
libtpu: 0.0.40
codegen_flags: <defaults>
</compile_context>

<pallas_src>
import functools

import jax
import jax.numpy as jnp
from jax import lax
from jax.experimental import pallas as pl
from jax.experimental.pallas import tpu as pltpu


def _round_up(x, m):
    return (x + m - 1) // m * m


def _mhsa_kernel(x_ref, params_ref, o_ref, *, batch, seq, num_heads, head_dim):
    B, T, H, D = batch, seq, num_heads, head_dim
    E = H * D
    BT = B * T
    n_out = o_ref.shape[-1]              # lane-dense (padded) output width

    x2 = x_ref[...]                      # (BT, E), native dtype

    # Parameter slab (one DMA):
    #   rows [0, E)   cols [0, 3E)   : fused QKV weight (scale folded into Q)
    #   rows [E, 2E)  cols [0, n_out): output projection, zero-padded lanes
    #   row  2E       cols [0, n_out): output bias, zero-padded lanes
    wqkv = params_ref[0:E, 0:3 * E]                       # (E, 3E)

    # One fused, wide QKV projection on the MXU (f32 accumulation).
    qkv = jnp.dot(x2, wqkv, preferred_element_type=jnp.float32)   # (BT, 3E) f32

    # Split per head along lanes (single-vreg extracts at E=32; pad the QKV
    # column blocks to 128-lane boundaries if E grows) and fold the head axis
    # into the leading batch axis of a single 3-D batched attention.
    def head_block(base, h):
        c0 = base + h * D
        return qkv[:, c0:c0 + D].reshape(B, T, D)         # leading-dim split only

    q3 = jnp.concatenate([head_block(0 * E, h) for h in range(H)], axis=0)  # (H*B,T,D)
    k3 = jnp.concatenate([head_block(1 * E, h) for h in range(H)], axis=0)
    v3 = jnp.concatenate([head_block(2 * E, h) for h in range(H)], axis=0)

    # Additive causal mask (0 / -1e30), built once, broadcast over heads*batch.
    rows = lax.broadcasted_iota(jnp.int32, (T, T), 0)
    cols = lax.broadcasted_iota(jnp.int32, (T, T), 1)
    add_mask = jnp.where(cols <= rows, jnp.float32(0.0),
                         jnp.float32(-1e30))[None]        # (1, T, T)

    # Batched scores / softmax / PV for ALL heads and batches at once.
    s = jnp.einsum('ztd,zsd->zts', q3, k3,
                   preferred_element_type=jnp.float32) + add_mask  # (H*B,T,T)
    s_max = jnp.max(s, axis=-1, keepdims=True)
    p = jnp.exp(s - s_max)
    p = p * pl.reciprocal(jnp.sum(p, axis=-1, keepdims=True), approx=True)
    o3 = jnp.einsum('zts,zsd->ztd', p, v3,
                    preferred_element_type=jnp.float32)            # (H*B,T,D)

    # Output projection + bias, lane-dense N (padded to 128 -> unmasked vst).
    # Summing per-head partial products (BT,D)@(D,n_out) is identical to
    # head-concat followed by (BT,E)@(E,n_out) but avoids a sub-128-lane
    # concatenate relayout.
    bias = params_ref[2 * E:2 * E + 1, 0:n_out]                    # (1, n_out)
    y = jnp.broadcast_to(bias.astype(jnp.float32), (BT, n_out))
    for h in range(H):
        o_h = o3[h * B:(h + 1) * B].reshape(BT, D)                 # (BT, D) f32
        w_h = params_ref[E + h * D:E + (h + 1) * D, 0:n_out]       # (D, n_out)
        y = y + jnp.dot(o_h, w_h, preferred_element_type=jnp.float32)

    # Dropout: eval mode => identity.
    o_ref[...] = y.astype(o_ref.dtype)


def multi_head_self_attention(x, wq, wk, wv, wp, bp, *, num_heads, hidden_dim):
    """x: (B, T, E); wq/wk/wv: (H, E, D); wp: (E, E) pre-transposed so y = h @ wp;
    bp: (1, E) or (E,)."""
    B, T, E = x.shape
    H, D = num_heads, hidden_dim
    assert E == H * D

    dt = x.dtype
    # ---- one-time wrapper-side weight prep (layout plumbing) ----
    scale = jnp.asarray(1.0 / (D ** 0.5), dt)
    # Fused QKV weight, head-major columns (col h*D+d == PyTorch concat order);
    # 1/sqrt(D) folded into the Q block so the kernel does no extra vmul.
    wq2 = jnp.transpose(wq, (1, 0, 2)).reshape(E, E) * scale
    wk2 = jnp.transpose(wk, (1, 0, 2)).reshape(E, E)
    wv2 = jnp.transpose(wv, (1, 0, 2)).reshape(E, E)
    wqkv = jnp.concatenate([wq2, wk2, wv2], axis=1)                # (E, 3E)

    n_pad = _round_up(E, 128)                 # lane-dense output width
    slab_cols = max(_round_up(3 * E, 128), n_pad)
    slab_rows = _round_up(2 * E + 1, 8)

    params = jnp.zeros((slab_rows, slab_cols), dtype=dt)
    params = params.at[0:E, 0:3 * E].set(wqkv.astype(dt))
    params = params.at[E:2 * E, 0:E].set(wp.astype(dt))
    params = params.at[2 * E, 0:E].set(bp.reshape(E).astype(dt))

    x2 = x.reshape(B * T, E)

    # NOTE: for non-toy shapes, stream x / params as bf16 (keep f32 accumulate)
    # and tile B*T / heads with a grid; at 2x8x32 everything fits one VMEM step.
    kernel = functools.partial(_mhsa_kernel, batch=B, seq=T,
                               num_heads=H, head_dim=D)
    out_pad = pl.pallas_call(
        kernel,
        out_shape=jax.ShapeDtypeStruct((B * T, n_pad), dt),
        grid=(1,),                                    # single step: whole problem in VMEM
        in_specs=[
            pl.BlockSpec((B * T, E), lambda i: (0, 0)),             # x (flattened)
            pl.BlockSpec((slab_rows, slab_cols), lambda i: (0, 0)), # fused param slab
        ],
        out_specs=pl.BlockSpec((B * T, n_pad), lambda i: (0, 0)),   # lane-dense output
        compiler_params=pltpu.CompilerParams(
            dimension_semantics=("arbitrary",)),
    )(x2, params)
    return out_pad[:, :E].reshape(B, T, E)


def reference_mhsa(x, wq, wk, wv, wp, bp, *, num_heads, hidden_dim):
    """Pure-JAX reference for correctness checking."""
    B, T, E = x.shape
    q = jnp.einsum('bte,hed->bhtd', x, wq)
    k = jnp.einsum('bte,hed->bhtd', x, wk)
    v = jnp.einsum('bte,hed->bhtd', x, wv)
    s = jnp.einsum('bhtd,bhsd->bhts', q, k) / jnp.sqrt(jnp.float32(hidden_dim))
    mask = jnp.tril(jnp.ones((T, T), dtype=bool))
    s = jnp.where(mask[None, None], s, -1e30)
    p = jax.nn.softmax(s, axis=-1)
    out_h = jnp.einsum('bhts,bhsd->bhtd', p, v)
    concat = jnp.transpose(out_h, (0, 2, 1, 3)).reshape(B, T, num_heads * hidden_dim)
    return concat @ wp + bp


if __name__ == "__main__":
    # Small shapes consistent with the module:
    #   num_heads=4, hidden_dim=8 => n_embed = 32, block_size (seq) = 8, batch = 2
    B, T = 2, 8
    num_heads, hidden_dim = 4, 8
    n_embed = num_heads * hidden_dim  # 32

    key = jax.random.PRNGKey(0)
    k_x, k_q, k_k, k_v, k_p, k_b = jax.random.split(key, 6)

    x = jax.random.normal(k_x, (B, T, n_embed), dtype=jnp.float32)

    # Deterministic parameter init (PyTorch-Linear-like uniform scale).
    lim_h = 1.0 / jnp.sqrt(jnp.float32(n_embed))
    wq = jax.random.uniform(k_q, (num_heads, n_embed, hidden_dim),
                            minval=-lim_h, maxval=lim_h, dtype=jnp.float32)
    wk = jax.random.uniform(k_k, (num_heads, n_embed, hidden_dim),
                            minval=-lim_h, maxval=lim_h, dtype=jnp.float32)
    wv = jax.random.uniform(k_v, (num_heads, n_embed, hidden_dim),
                            minval=-lim_h, maxval=lim_h, dtype=jnp.float32)
    wp = jax.random.uniform(k_p, (n_embed, n_embed),
                            minval=-lim_h, maxval=lim_h, dtype=jnp.float32)
    bp = jax.random.uniform(k_b, (1, n_embed),
                            minval=-lim_h, maxval=lim_h, dtype=jnp.float32)

    out = multi_head_self_attention(x, wq, wk, wv, wp, bp,
                                    num_heads=num_heads, hidden_dim=hidden_dim)
    out = jax.block_until_ready(out)

    ref = reference_mhsa(x, wq, wk, wv, wp, bp,
                         num_heads=num_heads, hidden_dim=hidden_dim)
    assert out.shape == (B, T, n_embed)
    # Tolerance accounts for the EUP approximate reciprocal in the softmax.
    assert jnp.allclose(out, ref, atol=5e-3, rtol=5e-3)

    print("KERNEL_OK")
</pallas_src>

<mosaic_0001>
module attributes {stable_mosaic.version = 11 : i64} {
  func.func @_mhsa_kernel(%arg0: i32, %arg1: memref<16x32xf32, #tpu.memory_space<vmem>>, %arg2: memref<72x128xf32, #tpu.memory_space<vmem>>, %arg3: memref<16x128xf32, #tpu.memory_space<vmem>>) attributes {dimension_semantics = [#tpu.dimension_semantics<arbitrary>], iteration_bounds = array<i64: 1>, scalar_prefetch = 0 : i64, scratch_operands = 0 : i64, tpu.core_type = #tpu.core_type<tc>, window_params = [{pipeline_mode = #tpu.pipeline_mode<synchronous>, transform_indices = @transform_0, window_bounds = array<i64: 16, 32>}, {pipeline_mode = #tpu.pipeline_mode<synchronous>, transform_indices = @transform_1, window_bounds = array<i64: 72, 128>}, {pipeline_mode = #tpu.pipeline_mode<synchronous>, transform_indices = @transform_2, window_bounds = array<i64: 16, 128>}]} {
    %c0 = arith.constant 0 : index
    %c0_0 = arith.constant 0 : index
    %0 = vector.load %arg1[%c0, %c0_0] : memref<16x32xf32, #tpu.memory_space<vmem>>, vector<16x32xf32>
    %c0_1 = arith.constant 0 : index
    %c0_2 = arith.constant 0 : index
    %1 = vector.load %arg2[%c0_1, %c0_2] : memref<72x128xf32, #tpu.memory_space<vmem>>, vector<32x96xf32>
    %cst = arith.constant dense<0.000000e+00> : vector<16x96xf32>
    %2 = tpu.matmul %0, %1, %cst {dimension_numbers = #tpu.dot_dimension_numbers<[1], [0], [0], [1], [0, 0, 1, 1], [], []>} : vector<16x32xf32>, vector<32x96xf32>, vector<16x96xf32> -> vector<16x96xf32>
    %3 = vector.extract_strided_slice %2 {offsets = [0, 0], sizes = [16, 8], strides = [1, 1]} : vector<16x96xf32> to vector<16x8xf32>
    %4 = vector.shape_cast %3 : vector<16x8xf32> to vector<2x8x8xf32>
    %5 = vector.extract_strided_slice %2 {offsets = [0, 8], sizes = [16, 8], strides = [1, 1]} : vector<16x96xf32> to vector<16x8xf32>
    %6 = vector.shape_cast %5 : vector<16x8xf32> to vector<2x8x8xf32>
    %7 = vector.extract_strided_slice %2 {offsets = [0, 16], sizes = [16, 8], strides = [1, 1]} : vector<16x96xf32> to vector<16x8xf32>
    %8 = vector.shape_cast %7 : vector<16x8xf32> to vector<2x8x8xf32>
    %9 = vector.extract_strided_slice %2 {offsets = [0, 24], sizes = [16, 8], strides = [1, 1]} : vector<16x96xf32> to vector<16x8xf32>
    %10 = vector.shape_cast %9 : vector<16x8xf32> to vector<2x8x8xf32>
    %11 = tpu.concatenate %4, %6, %8, %10 in 0 : vector<2x8x8xf32>, vector<2x8x8xf32>, vector<2x8x8xf32>, vector<2x8x8xf32> -> vector<8x8x8xf32>
    %12 = vector.extract_strided_slice %2 {offsets = [0, 32], sizes = [16, 8], strides = [1, 1]} : vector<16x96xf32> to vector<16x8xf32>
    %13 = vector.shape_cast %12 : vector<16x8xf32> to vector<2x8x8xf32>
    %14 = vector.extract_strided_slice %2 {offsets = [0, 40], sizes = [16, 8], strides = [1, 1]} : vector<16x96xf32> to vector<16x8xf32>
    %15 = vector.shape_cast %14 : vector<16x8xf32> to vector<2x8x8xf32>
    %16 = vector.extract_strided_slice %2 {offsets = [0, 48], sizes = [16, 8], strides = [1, 1]} : vector<16x96xf32> to vector<16x8xf32>
    %17 = vector.shape_cast %16 : vector<16x8xf32> to vector<2x8x8xf32>
    %18 = vector.extract_strided_slice %2 {offsets = [0, 56], sizes = [16, 8], strides = [1, 1]} : vector<16x96xf32> to vector<16x8xf32>
    %19 = vector.shape_cast %18 : vector<16x8xf32> to vector<2x8x8xf32>
    %20 = tpu.concatenate %13, %15, %17, %19 in 0 : vector<2x8x8xf32>, vector<2x8x8xf32>, vector<2x8x8xf32>, vector<2x8x8xf32> -> vector<8x8x8xf32>
    %21 = vector.extract_strided_slice %2 {offsets = [0, 64], sizes = [16, 8], strides = [1, 1]} : vector<16x96xf32> to vector<16x8xf32>
    %22 = vector.shape_cast %21 : vector<16x8xf32> to vector<2x8x8xf32>
    %23 = vector.extract_strided_slice %2 {offsets = [0, 72], sizes = [16, 8], strides = [1, 1]} : vector<16x96xf32> to vector<16x8xf32>
    %24 = vector.shape_cast %23 : vector<16x8xf32> to vector<2x8x8xf32>
    %25 = vector.extract_strided_slice %2 {offsets = [0, 80], sizes = [16, 8], strides = [1, 1]} : vector<16x96xf32> to vector<16x8xf32>
    %26 = vector.shape_cast %25 : vector<16x8xf32> to vector<2x8x8xf32>
    %27 = vector.extract_strided_slice %2 {offsets = [0, 88], sizes = [16, 8], strides = [1, 1]} : vector<16x96xf32> to vector<16x8xf32>
    %28 = vector.shape_cast %27 : vector<16x8xf32> to vector<2x8x8xf32>
    %29 = tpu.concatenate %22, %24, %26, %28 in 0 : vector<2x8x8xf32>, vector<2x8x8xf32>, vector<2x8x8xf32>, vector<2x8x8xf32> -> vector<8x8x8xf32>
    %30 = tpu.iota {dimensions = array<i32: 0>} : vector<8x8xi32>
    %31 = tpu.iota {dimensions = array<i32: 1>} : vector<8x8xi32>
    %32 = arith.cmpi sle, %31, %30 : vector<8x8xi32>
    %cst_3 = arith.constant 0.000000e+00 : f32
    %cst_4 = arith.constant -1.000000e+30 : f32
    %33 = vector.broadcast %cst_3 : f32 to vector<8x8xf32>
    %34 = vector.broadcast %cst_4 : f32 to vector<8x8xf32>
    %35 = arith.select %32, %33, %34 : vector<8x8xi1>, vector<8x8xf32>
    %36 = vector.shape_cast %35 : vector<8x8xf32> to vector<1x8x8xf32>
    "tpu.trace_start"() <{level = 10 : i32, message = "ztd,zsd->zts"}> : () -> ()
    %cst_5 = arith.constant dense<0.000000e+00> : vector<8x8x8xf32>
    %37 = tpu.matmul %11, %20, %cst_5 {dimension_numbers = #tpu.dot_dimension_numbers<[2], [2], [1], [1], [0, 0, 0, 1, 1, 1], [0], [0]>} : vector<8x8x8xf32>, vector<8x8x8xf32>, vector<8x8x8xf32> -> vector<8x8x8xf32>
    "tpu.trace_stop"() : () -> ()
    %38 = vector.broadcast %36 : vector<1x8x8xf32> to vector<8x8x8xf32>
    %39 = arith.addf %37, %38 : vector<8x8x8xf32>
    %cst_6 = arith.constant dense<0xFF800000> : vector<8x8xf32>
    %40 = vector.multi_reduction <maximumf>, %39, %cst_6 [2] : vector<8x8x8xf32> to vector<8x8xf32>
    %41 = vector.shape_cast %40 : vector<8x8xf32> to vector<8x8x1xf32>
    %42 = vector.broadcast %41 : vector<8x8x1xf32> to vector<8x8x8xf32>
    %43 = arith.subf %39, %42 : vector<8x8x8xf32>
    %44 = math.exp %43 : vector<8x8x8xf32>
    %cst_7 = arith.constant dense<0.000000e+00> : vector<8x8xf32>
    %45 = vector.multi_reduction <add>, %44, %cst_7 [2] : vector<8x8x8xf32> to vector<8x8xf32>
    %46 = vector.shape_cast %45 : vector<8x8xf32> to vector<8x8x1xf32>
    %47 = tpu.reciprocal %46 {approx = true} : vector<8x8x1xf32> -> vector<8x8x1xf32>
    %48 = vector.broadcast %47 : vector<8x8x1xf32> to vector<8x8x8xf32>
    %49 = arith.mulf %44, %48 : vector<8x8x8xf32>
    "tpu.trace_start"() <{level = 10 : i32, message = "zts,zsd->ztd"}> : () -> ()
    %cst_8 = arith.constant dense<0.000000e+00> : vector<8x8x8xf32>
    %50 = tpu.matmul %49, %29, %cst_8 {dimension_numbers = #tpu.dot_dimension_numbers<[2], [1], [1], [2], [0, 0, 0, 1, 1, 2], [0], [0]>} : vector<8x8x8xf32>, vector<8x8x8xf32>, vector<8x8x8xf32> -> vector<8x8x8xf32>
    "tpu.trace_stop"() : () -> ()
    %c64 = arith.constant 64 : index
    %c0_9 = arith.constant 0 : index
    %51 = vector.load %arg2[%c64, %c0_9] : memref<72x128xf32, #tpu.memory_space<vmem>>, vector<1x128xf32>
    %52 = vector.shape_cast %51 : vector<1x128xf32> to vector<1x128xf32>
    %53 = vector.broadcast %52 : vector<1x128xf32> to vector<16x128xf32>
    %54 = vector.extract_strided_slice %50 {offsets = [0, 0, 0], sizes = [2, 8, 8], strides = [1, 1, 1]} : vector<8x8x8xf32> to vector<2x8x8xf32>
    %55 = vector.shape_cast %54 : vector<2x8x8xf32> to vector<16x8xf32>
    %c32 = arith.constant 32 : index
    %c0_10 = arith.constant 0 : index
    %56 = vector.load %arg2[%c32, %c0_10] : memref<72x128xf32, #tpu.memory_space<vmem>>, vector<8x128xf32>
    %cst_11 = arith.constant dense<0.000000e+00> : vector<16x128xf32>
    %57 = tpu.matmul %55, %56, %cst_11 {dimension_numbers = #tpu.dot_dimension_numbers<[1], [0], [0], [1], [0, 0, 1, 1], [], []>} : vector<16x8xf32>, vector<8x128xf32>, vector<16x128xf32> -> vector<16x128xf32>
    %58 = arith.addf %53, %57 : vector<16x128xf32>
    %59 = vector.extract_strided_slice %50 {offsets = [2, 0, 0], sizes = [2, 8, 8], strides = [1, 1, 1]} : vector<8x8x8xf32> to vector<2x8x8xf32>
    %60 = vector.shape_cast %59 : vector<2x8x8xf32> to vector<16x8xf32>
    %c40 = arith.constant 40 : index
    %c0_12 = arith.constant 0 : index
    %61 = vector.load %arg2[%c40, %c0_12] : memref<72x128xf32, #tpu.memory_space<vmem>>, vector<8x128xf32>
    %cst_13 = arith.constant dense<0.000000e+00> : vector<16x128xf32>
    %62 = tpu.matmul %60, %61, %cst_13 {dimension_numbers = #tpu.dot_dimension_numbers<[1], [0], [0], [1], [0, 0, 1, 1], [], []>} : vector<16x8xf32>, vector<8x128xf32>, vector<16x128xf32> -> vector<16x128xf32>
    %63 = arith.addf %58, %62 : vector<16x128xf32>
    %64 = vector.extract_strided_slice %50 {offsets = [4, 0, 0], sizes = [2, 8, 8], strides = [1, 1, 1]} : vector<8x8x8xf32> to vector<2x8x8xf32>
    %65 = vector.shape_cast %64 : vector<2x8x8xf32> to vector<16x8xf32>
    %c48 = arith.constant 48 : index
    %c0_14 = arith.constant 0 : index
    %66 = vector.load %arg2[%c48, %c0_14] : memref<72x128xf32, #tpu.memory_space<vmem>>, vector<8x128xf32>
    %cst_15 = arith.constant dense<0.000000e+00> : vector<16x128xf32>
    %67 = tpu.matmul %65, %66, %cst_15 {dimension_numbers = #tpu.dot_dimension_numbers<[1], [0], [0], [1], [0, 0, 1, 1], [], []>} : vector<16x8xf32>, vector<8x128xf32>, vector<16x128xf32> -> vector<16x128xf32>
    %68 = arith.addf %63, %67 : vector<16x128xf32>
    %69 = vector.extract_strided_slice %50 {offsets = [6, 0, 0], sizes = [2, 8, 8], strides = [1, 1, 1]} : vector<8x8x8xf32> to vector<2x8x8xf32>
    %70 = vector.shape_cast %69 : vector<2x8x8xf32> to vector<16x8xf32>
    %c56 = arith.constant 56 : index
    %c0_16 = arith.constant 0 : index
    %71 = vector.load %arg2[%c56, %c0_16] : memref<72x128xf32, #tpu.memory_space<vmem>>, vector<8x128xf32>
    %cst_17 = arith.constant dense<0.000000e+00> : vector<16x128xf32>
    %72 = tpu.matmul %70, %71, %cst_17 {dimension_numbers = #tpu.dot_dimension_numbers<[1], [0], [0], [1], [0, 0, 1, 1], [], []>} : vector<16x8xf32>, vector<8x128xf32>, vector<16x128xf32> -> vector<16x128xf32>
    %73 = arith.addf %68, %72 : vector<16x128xf32>
    %c0_18 = arith.constant 0 : index
    %c0_19 = arith.constant 0 : index
    %74 = vector.load %arg3[%c0_18, %c0_19] : memref<16x128xf32, #tpu.memory_space<vmem>>, vector<16x128xf32>
    tpu.vector_store %arg3[%c0_18, %c0_19], %73 {strides = array<i32>} : memref<16x128xf32, #tpu.memory_space<vmem>>, vector<16x128xf32>,
    return
  }
  func.func @transform_0(%arg0: i32) -> (i32, i32) {
    %c0_i32 = arith.constant 0 : i32
    %c0_i32_0 = arith.constant 0 : i32
    %c0_i32_1 = arith.constant 0 : i32
    return %c0_i32, %c0_i32_0 : i32, i32
  }
  func.func @transform_1(%arg0: i32) -> (i32, i32) {
    %c0_i32 = arith.constant 0 : i32
    %c0_i32_0 = arith.constant 0 : i32
    %c0_i32_1 = arith.constant 0 : i32
    return %c0_i32, %c0_i32_0 : i32, i32
  }
  func.func @transform_2(%arg0: i32) -> (i32, i32) {
    %c0_i32 = arith.constant 0 : i32
    %c0_i32_0 = arith.constant 0 : i32
    %c0_i32_1 = arith.constant 0 : i32
    return %c0_i32, %c0_i32_0 : i32, i32
  }
}

</mosaic_0001>

<bundles_post_ra>
// kernel: tpu_custom_call.1
= control target key start
LH: loop header
LB: loop body
LE: loop exit
PB: predicated region body
PF: predicated region fallthrough
CT: control target
= control target key end

     0   :  { %7 = vsyncpa [#allocation3], 0  ;;  %s2374_s0 = inlined_call_operand.hbm [shape: f32[16,32], index: 0, kind: input, shape index: {}]   ;;  %s2375_s1 = inlined_call_operand.hbm [shape: f32[72,128], index: 1, kind: input, shape index: {}]   ;;  %s2376_s2 = inlined_call_operand.hbm [shape: f32[16,128], index: 2, kind: output, shape index: {}]  }
   0x1   :  { %8 = vsyncpa [#allocation6], 0 }
   0x2   :  { %9 = vsyncpa [#allocation4], 0  ;;  %s2143_s9 = smov [#allocation2]   ;;  %s2071_s13 = scalar_lea.hbm %s2374_s0, 256 }
   0x3   :  { %s15_s10 = sshll.u32 %s2143_s9, 4  ;;  %p2072_p0 = scmp.ne.s32.totalorder %s2374_s0, %s2071_s13  ;;  %s16_s10 = int_to_ptr.vmem [resolvable:$true] %s15_s10 }
   0x4   :  { %p2075_p1 = scmp.lt.u32.totalorder %s2071_s13, %s2374_s0 }
   0x6   :  { %p2077_p2 = pnand %p2075_p1, %p2072_p0 }
   0x8   :  { %2080 = shalt.err (!%p2077_p2)
}
   0x9   :  { %s2081_s18 = scalar_lea.vmem %s16_s10, 256  ;;  %p2086_p4 = scmp.lt.s32.totalorder %s16_s10, %s16_s10 }
   0xa   :  { %p2082_p3 = scmp.ne.s32.totalorder %s16_s10, %s2081_s18  ;;  %p2087_p5 = scmp.lt.s32.totalorder %s2081_s18, %s2081_s18 }
   0xc   :  { %p2088_p6 = por %p2087_p5, %p2086_p4 }
   0xe   :  { %p2089_p7 = pnand %p2088_p6, %p2082_p3 }
  0x10   :  { %2092 = shalt.err (!%p2089_p7)
}
  0x11   :  { %s2144_s19 = smov 128   ;;  %s2145_s20 = smov 8  }
  0x12   :  { %21 = dma.hbm_to_vmem [thread:$0]  %s2374_s0, 256, %s16_s10, [#allocation3], %s2144_s19, %s2144_s19, %s2145_s20  }
  0x13   :  { %s2146_s23 = smov [#allocation5]   ;;  %s2093_s27 = scalar_lea.hbm %s2375_s1, 1152 }
  0x14   :  { %s27_s24 = sshll.u32 %s2146_s23, 4  ;;  %p2094_p8 = scmp.ne.s32.totalorder %s2375_s1, %s2093_s27  ;;  %s28_s24 = int_to_ptr.vmem [resolvable:$true] %s27_s24 }
  0x15   :  { %p2097_p9 = scmp.lt.u32.totalorder %s2093_s27, %s2375_s1 }
  0x17   :  { %p2099_p10 = pnand %p2097_p9, %p2094_p8 }
  0x19   :  { %2102 = shalt.err (!%p2099_p10)
}
  0x1a   :  { %s2103_s4 = scalar_lea.vmem %s28_s24, 1152  ;;  %p2108_p12 = scmp.lt.s32.totalorder %s28_s24, %s28_s24 }
  0x1b   :  { %p2104_p11 = scmp.ne.s32.totalorder %s28_s24, %s2103_s4  ;;  %p2109_p13 = scmp.lt.s32.totalorder %s2103_s4, %s2103_s4 }
  0x1d   :  { %p2110_p0 = por %p2109_p13, %p2108_p12 }
  0x1f   :  { %p2111_p1 = pnand %p2110_p0, %p2104_p11 }
  0x21   :  { %2114 = shalt.err (!%p2111_p1)
}
  0x22   :  { %33 = dma.hbm_to_vmem [thread:$0]  %s2375_s1, 1152, %s28_s24, [#allocation6], %s2144_s19, %s2144_s19, %s2145_s20  }
  0x23   :  { %2137 = dma.done.wait [#allocation3], 256  }
  0x24   :  { %2138 = vsyncadd [#allocation3], 4294967040 }
  0x25   :  { %2139 = dma.done.wait [#allocation6], 1152  }
  0x26   :  { %2140 = vsyncadd [#allocation6], 4294966144  ;;  %vm46_vm0 = vcmask 261120   ;;  %v42_v0 = vld [vmem:[#allocation5] sm:$0xff]  ;;  %v43_v1 = vld [vmem:[#allocation5 + $0x8] sm:$0xff]  ;;  %v2147_v8 = vmov 0.0   ;;  %v142_v26 = vlaneseq }
  0x27   :  { %v44_v2 = vld [vmem:[#allocation5 + $0x10] sm:$0xff]  ;;  %v2010_v3 = vpack.c.bf16 %v43_v1, %v42_v0  ;;  %v45_v4 = vld [vmem:[#allocation5 + $0x18] sm:$0xff]  ;;  %1920 = vmatprep.subr.mxu0 %v2147_v8  ;;  %s2148_s1 = smov 112   ;;  %s2149_s6 = smov 120   ;;  %vm2150_vm1 = vmmov 0   ;;  %vm150_vm2 = vcmask 64512  }
  0x28   :  { %v40_v5 = vld [vmem:[#allocation2] sm:$0xff]  ;;  %v2014_v6 = vpack.c.bf16 %v45_v4, %v44_v2  ;;  %v41_v7 = vld [vmem:[#allocation2 + $0x8] sm:$0xff]  ;;  %1922 = vmatprep.mubr.msk.f32.mxu0 %vm2150_vm1, %v2147_v8  ;;  %s2151_s7 = smov 104   ;;  %s2152_s8 = smov 96   ;;  %v143_v27 = vshrl.u32 %v142_v26, 7  ;;  %v145_v28 = vand.u32 127, %v142_v26 }
  0x29   :  { %1907 = vmatprep.mubr.msk.f32.mxu1 %vm46_vm0, %v40_v5  ;;  %2011 = vmatprep.subr.bf16.mxu1 %v2010_v3  ;;  %s2153_s9 = smov 64   ;;  %v2154_v29 = vmov -1e+30   ;;  %s2155_s10 = smov [#allocation7]  }
  0x2a   :  { %2013 = vmatpush3.bf16.msra.mxu1 %v2010_v3  ;;  %vm146_vm3 = vcmp.le.s32.totalorder %v145_v28, %v143_v27  ;;  %s1801_s11 = sshll.u32 %s2155_s10, 4  ;;  %s1802_s11 = int_to_ptr.vmem [resolvable:$true] %s1801_s11 }
  0x2b   :  { %2015 = vmatprep.subr.bf16.mxu1 %v2014_v6  ;;  %v147_v30 = vsel %vm146_vm3, 0.0, %v2154_v29  ;;  %s2115_s12 = scalar_lea.vmem %s1802_s11, 256  ;;  %p2120_p3 = scmp.lt.s32.totalorder %s1802_s11, %s1802_s11 }
  0x2c   :  { %p2116_p2 = scmp.ne.s32.totalorder %s1802_s11, %s2115_s12  ;;  %p2121_p4 = scmp.lt.s32.totalorder %s2115_s12, %s2115_s12 }
  0x2e   :  { %2017 = vmatpush3.bf16.msra.mxu1 %v2014_v6  ;;  %p2122_p5 = por %p2121_p4, %p2120_p3 }
  0x2f   :  { %1910 = vmatprep.subr.mxu1 %v2147_v8 }
  0x30   :  { %p2123_p6 = pnand %p2122_p5, %p2116_p2 }
  0x31   :  { %1908 = vmatmul.mubr.msk.f32.vlgmr.msra.gmra.mrb[0].mxu1 %vm46_vm0, %v41_v7 }
  0x32   :  { %1912 = vmatprep.mubr.msk.f32.mxu1 %vm2150_vm1, %v2147_v8 }
 0x104   :  { %v2203_v9 = vpop.f32.mrb[0].mxu1 }
 0x105   :  { %v119_v10 = vpop.f32.mrb[1].mxu1 }
 0x106   :  { %134 = vrot.lane.b32.xlu1 %v119_v10, %s2148_s1  ;;  %130 = vrot.lane.b32.xlu0 %v119_v10, %s2149_s6 }
 0x10a   :  { %136 = vrot.lane.b32.xlu1 %v2203_v9, %s2148_s1  ;;  %132 = vrot.lane.b32.xlu0 %v2203_v9, %s2149_s6 }
 0x10e   :  { %140 = vrot.lane.b32.xlu1 %v2203_v9, %s2151_s7  ;;  %138 = vrot.lane.b32.xlu0 %v119_v10, %s2151_s7 }
 0x112   :  { %225 = vrot.lane.b32.xlu1 %v2203_v9, %s2152_s8  ;;  %148 = vrot.lane.b32.xlu0 %v119_v10, %s2152_s8 }
 0x178   :  { %v2213_v11 = vpop.permute.xlu1 %134  ;;  %v2215_v12 = vpop.permute.xlu0 %130 }
 0x179   :  { %301 = vrot.lane.b32.xlu0 %v2215_v12, %s2152_s8 }
 0x17c   :  { %v2218_v13 = vpop.permute.xlu1 %136  ;;  %v2220_v14 = vpop.permute.xlu0 %132 }
 0x17d   :  { %453 = vrot.lane.b32.xlu0 %v2213_v11, %s2152_s8  ;;  %377 = vrot.lane.b32.xlu1 %v2220_v14, %s2152_s8 }
 0x180   :  { %v2224_v15 = vpop.permute.xlu0 %138  ;;  %v2228_v16 = vpop.permute.xlu1 %140 }
 0x181   :  { %529 = vrot.lane.b32.xlu1 %v2218_v13, %s2152_s8  ;;  %605 = vrot.lane.b32.xlu0 %v2224_v15, %s2152_s8 }
 0x184   :  { %v149_v17 = vpop.permute.xlu0 %148  ;;  %v226_v18 = vpop.permute.xlu1 %225 }
 0x185   :  { %681 = vrot.lane.b32.xlu1 %v2228_v16, %s2152_s8  ;;  %1911 = vmatpush3.xpose.msk.msra.mxu1 %vm150_vm2, %v149_v17 }
 0x186   :  { %1915 = vmatprep.subr.mxu1 %v2147_v8 }
 0x188   :  { %1913 = vmatmul.mubr.msk.f32.vlgmr.msra.gmra.mrb[2].mxu1 %vm150_vm2, %v119_v10 }
 0x189   :  { %845 = vrot.lane.b32.xlu1 %v119_v10, %s2153_s9  ;;  %1916 = vmatpush3.xpose.msk.msra.mxu1 %vm150_vm2, %v226_v18 }
 0x18a   :  { %1917 = vmatprep.mubr.msk.f32.mxu1 %vm2150_vm1, %v2147_v8  ;;  %1925 = vmatprep.subr.mxu1 %v2147_v8 }
 0x18c   :  { %1918 = vmatmul.mubr.msk.f32.vlgmr.msra.gmra.mrb[4].mxu1 %vm150_vm2, %v2203_v9 }
 0x18d   :  { %1927 = vmatprep.mubr.msk.f32.mxu1 %vm2150_vm1, %v2147_v8 }
 0x1eb   :  { %v302_v19 = vpop.permute.xlu0 %301 }
 0x1ec   :  { %1921 = vmatpush3.xpose.msk.msra.mxu0 %vm150_vm2, %v302_v19 }
 0x1ed   :  { %1930 = vmatprep.subr.mxu0 %v2147_v8 }
 0x1ef   :  { %v378_v20 = vpop.permute.xlu1 %377  ;;  %1923 = vmatmul.mubr.msk.f32.vlgmr.msra.gmra.mrb[0].mxu0 %vm150_vm2, %v2215_v12  ;;  %v454_v21 = vpop.permute.xlu0 %453 }
 0x1f0   :  { %1926 = vmatpush3.xpose.msk.msra.mxu1 %vm150_vm2, %v378_v20  ;;  %1931 = vmatpush3.xpose.msk.msra.mxu0 %vm150_vm2, %v454_v21 }
 0x1f1   :  { %1932 = vmatprep.mubr.msk.f32.mxu0 %vm2150_vm1, %v2147_v8  ;;  %1935 = vmatprep.subr.mxu1 %v2147_v8 }
 0x1f2   :  { %1940 = vmatprep.subr.mxu0 %v2147_v8 }
 0x1f3   :  { %v530_v22 = vpop.permute.xlu1 %529  ;;  %1928 = vmatmul.mubr.msk.f32.vlgmr.msra.gmra.mrb[6].mxu1 %vm150_vm2, %v2220_v14  ;;  %1933 = vmatmul.mubr.msk.f32.vlgmr.msra.gmra.mrb[2].mxu0 %vm150_vm2, %v2213_v11  ;;  %v606_v23 = vpop.permute.xlu0 %605 }
 0x1f4   :  { %1936 = vmatpush3.xpose.msk.msra.mxu1 %vm150_vm2, %v530_v22  ;;  %1941 = vmatpush3.xpose.msk.msra.mxu0 %vm150_vm2, %v606_v23 }
 0x1f5   :  { %1937 = vmatprep.mubr.msk.f32.mxu1 %vm2150_vm1, %v2147_v8  ;;  %1942 = vmatprep.mubr.msk.f32.mxu0 %vm2150_vm1, %v2147_v8 }
 0x1f6   :  { %1945 = vmatprep.subr.mxu1 %v2147_v8  ;;  %1950 = vmatprep.subr.mxu0 %v2147_v8 }
 0x1f7   :  { %v682_v24 = vpop.permute.xlu1 %681  ;;  %1938 = vmatmul.mubr.msk.f32.vlgmr.msra.gmra.mrb[8].mxu1 %vm150_vm2, %v2218_v13  ;;  %1943 = vmatmul.mubr.msk.f32.vlgmr.msra.gmra.mrb[4].mxu0 %vm150_vm2, %v2224_v15 }
 0x1f8   :  { %1946 = vmatpush3.xpose.msk.msra.mxu1 %vm150_vm2, %v682_v24  ;;  %1947 = vmatprep.mubr.msk.f32.mxu1 %vm2150_vm1, %v2147_v8 }
 0x1f9   :  { %1955 = vmatprep.subr.mxu1 %v2147_v8  ;;  %1952 = vmatprep.mubr.msk.f32.mxu0 %vm2150_vm1, %v2147_v8 }
 0x1fb   :  { %v846_v25 = vpop.permute.xlu1 %845  ;;  %1948 = vmatmul.mubr.msk.f32.vlgmr.msra.gmra.mrb[10].mxu1 %vm150_vm2, %v2228_v16 }
 0x1fc   :  { %1951 = vmatpush3.msra.mxu0 %v846_v25  ;;  %1957 = vmatprep.mubr.msk.f32.mxu1 %vm2150_vm1, %v2147_v8 }
 0x1fd   :  { %1960 = vmatprep.subr.mxu0 %v2147_v8 }
 0x25b   :  { %v221_v31 = vpop.f32.mrb[2].mxu1 }
 0x25c   :  { %v222_v32 = vadd.f32 %v221_v31, %v147_v30  ;;  %v1914_v33 = vpop.f32.mrb[3].mxu1 }
 0x25e   :  { %v757_v34 = vsel %vm150_vm2, %v222_v32, -inf }
 0x25f   :  { %758 = vmax.xlane.f32.xlu0 %v757_v34  ;;  %v297_v35 = vpop.f32.mrb[4].mxu1 }
 0x260   :  { %v298_v36 = vadd.f32 %v297_v35, %v147_v30  ;;  %v1919_v37 = vpop.f32.mrb[5].mxu1 }
 0x262   :  { %v760_v38 = vsel %vm150_vm2, %v298_v36, -inf }
 0x263   :  { %761 = vmax.xlane.f32.xlu1 %v760_v38 }
 0x2c2   :  { %v373_v39 = vpop.f32.mrb[0].mxu0 }
 0x2c3   :  { %v1924_v40 = vpop.f32.mrb[1].mxu0  ;;  %v374_v47 = vadd.f32 %v373_v39, %v147_v30 }
 0x2c5   :  { %v763_v55 = vsel %vm150_vm2, %v374_v47, -inf }
 0x2c6   :  { %v449_v41 = vpop.f32.mrb[6].mxu1  ;;  %v525_v42 = vpop.f32.mrb[2].mxu0 }
 0x2c7   :  { %v450_v43 = vadd.f32 %v449_v41, %v147_v30  ;;  %v526_v44 = vadd.f32 %v525_v42, %v147_v30  ;;  %v1929_v45 = vpop.f32.mrb[7].mxu1  ;;  %v1934_v46 = vpop.f32.mrb[3].mxu0 }
 0x2c9   :  { %v766_v48 = vsel %vm150_vm2, %v450_v43, -inf  ;;  %v769_v49 = vsel %vm150_vm2, %v526_v44, -inf }
 0x2ca   :  { %767 = vmax.xlane.f32.xlu0 %v766_v48  ;;  %v601_v50 = vpop.f32.mrb[8].mxu1  ;;  %770 = vmax.xlane.f32.xlu1 %v769_v49  ;;  %v677_v51 = vpop.f32.mrb[4].mxu0 }
 0x2cb   :  { %v1939_v52 = vpop.f32.mrb[9].mxu1  ;;  %v1944_v53 = vpop.f32.mrb[5].mxu0  ;;  %v602_v54 = vadd.f32 %v601_v50, %v147_v30  ;;  %v678_v0 = vadd.f32 %v677_v51, %v147_v30 }
 0x2cd   :  { %v772_v59 = vsel %vm150_vm2, %v602_v54, -inf  ;;  %v775_v1 = vsel %vm150_vm2, %v678_v0, -inf }
 0x2ce   :  { %v753_v56 = vpop.f32.mrb[10].mxu1  ;;  %764 = vmax.xlane.f32.xlu0 %v763_v55 }
 0x2cf   :  { %v1949_v57 = vpop.f32.mrb[11].mxu1  ;;  %v754_v58 = vadd.f32 %v753_v56, %v147_v30 }
 0x2d1   :  { %v778_v60 = vsel %vm150_vm2, %v754_v58, -inf }
 0x2d2   :  { %773 = vmax.xlane.f32.xlu0 %v772_v59 }
 0x2d6   :  { %779 = vmax.xlane.f32.xlu0 %v778_v60 }
 0x2db   :  { %997 = vrot.lane.b32.xlu1 %v2215_v12, %s2153_s9 }
 0x2ec   :  { %921 = vrot.lane.b32.xlu0 %v2203_v9, %s2153_s9  ;;  %v759_v4 = vpop.xlane.xlu0 %758 }
 0x2ed   :  { %v781_v5 = vsub.f32 %v222_v32, %v759_v4 }
 0x2ef   :  { %v789_v6 = vmul.f32 1.442695, %v781_v5 }
 0x2f0   :  { %v762_v61 = vpop.xlane.xlu1 %761 }
 0x2f1   :  { %v782_v62 = vsub.f32 %v298_v36, %v762_v61 }
 0x2f3   :  { %v791_v63 = vmul.f32 1.442695, %v782_v62 }
 0x2f5   :  { %2039 = vpow2.f32 %v791_v63  ;;  %v1458_v63 = vld [vmem:[#allocation5 + $0x20] sm:$0xff] }
 0x2f6   :  { %2041 = vpow2.f32 %v789_v6 }
 0x2ff   :  { %776 = vmax.xlane.f32.xlu1 %v775_v1  ;;  %v2040_v2 = vpop.eup %2039 }
 0x300   :  { %v808_v3 = vsel %vm150_vm2, %v2040_v2, 0.0  ;;  %v2295_v7 = vpop.eup %2041 }
 0x301   :  { %v805_v9 = vsel %vm150_vm2, %v2295_v7, 0.0 }
 0x30b   :  { %809 = vadd.xlane.f32.xlu0 %v808_v3 }
 0x310   :  { %1073 = vrot.lane.b32.xlu1 %v2220_v14, %s2153_s9 }
 0x334   :  { %806 = vadd.xlane.f32.xlu1 %v805_v9  ;;  %v1542_v9 = vld [vmem:[#allocation5 + $0x28] sm:$0xff] }
 0x345   :  { %1225 = vrot.lane.b32.xlu1 %v2218_v13, %s2153_s9 }
 0x357   :  { %v771_v10 = vpop.xlane.xlu1 %770  ;;  %v768_v12 = vpop.xlane.xlu0 %767 }
 0x358   :  { %v784_v17 = vsub.f32 %v450_v43, %v768_v12  ;;  %v785_v18 = vsub.f32 %v526_v44, %v771_v10 }
 0x35a   :  { %v795_v19 = vmul.f32 1.442695, %v784_v17  ;;  %v797_v21 = vmul.f32 1.442695, %v785_v18 }
 0x35b   :  { %v765_v20 = vpop.xlane.xlu0 %764  ;;  %v998_v31 = vpop.permute.xlu1 %997 }
 0x35c   :  { %v783_v14 = vsub.f32 %v374_v47, %v765_v20  ;;  %2043 = vpow2.f32 %v795_v19  ;;  %v1626_v19 = vld [vmem:[#allocation5 + $0x30] sm:$0xff] }
 0x35e   :  { %v793_v22 = vmul.f32 1.442695, %v783_v14 }
 0x35f   :  { %v774_v23 = vpop.xlane.xlu0 %773 }
 0x360   :  { %2045 = vpow2.f32 %v793_v22  ;;  %v786_v32 = vsub.f32 %v602_v54, %v774_v23  ;;  %v1710_v22 = vld [vmem:[#allocation5 + $0x38] sm:$0xff] }
 0x361   :  { %2047 = vpow2.f32 %v797_v21 }
 0x362   :  { %v799_v33 = vmul.f32 1.442695, %v786_v32 }
 0x363   :  { %v780_v24 = vpop.xlane.xlu0 %779 }
 0x364   :  { %v788_v34 = vsub.f32 %v754_v58, %v780_v24  ;;  %2049 = vpow2.f32 %v799_v33 }
 0x366   :  { %v2044_v25 = vpop.eup %2043  ;;  %v803_v38 = vmul.f32 1.442695, %v788_v34 }
 0x367   :  { %v922_v26 = vpop.permute.xlu0 %921  ;;  %v814_v27 = vsel %vm150_vm2, %v2044_v25, 0.0 }
 0x368   :  { %1956 = vmatpush3.msra.mxu1 %v922_v26  ;;  %815 = vadd.xlane.f32.xlu0 %v814_v27 }
 0x369   :  { %1965 = vmatprep.subr.mxu1 %v2147_v8 }
 0x36a   :  { %v2046_v13 = vpop.eup %2045 }
 0x36b   :  { %v811_v28 = vsel %vm150_vm2, %v2046_v13, 0.0  ;;  %v2304_v29 = vpop.eup %2047 }
 0x36c   :  { %812 = vadd.xlane.f32.xlu1 %v811_v28  ;;  %v817_v30 = vsel %vm150_vm2, %v2304_v29, 0.0 }
 0x36e   :  { %v2310_v40 = vpop.eup %2049 }
 0x370   :  { %818 = vadd.xlane.f32.xlu1 %v817_v30  ;;  %v1840_v30 = vld [vmem:[#allocation5 + $0x40] ss:$0 sm:$0xff] }
 0x37e   :  { %1149 = vrot.lane.b32.xlu0 %v2213_v11, %s2153_s9  ;;  %v820_v11 = vsel %vm150_vm2, %v2310_v40, 0.0 }
 0x38c   :  { %v777_v35 = vpop.xlane.xlu1 %776 }
 0x38d   :  { %v787_v36 = vsub.f32 %v678_v0, %v777_v35 }
 0x38f   :  { %v801_v37 = vmul.f32 1.442695, %v787_v36 }
 0x390   :  { %v1074_v47 = vpop.permute.xlu1 %1073 }
 0x391   :  { %2051 = vpow2.f32 %v801_v37 }
 0x392   :  { %2053 = vpow2.f32 %v803_v38 }
 0x398   :  { %v810_v39 = vpop.xlane.xlu0 %809 }
 0x399   :  { %2055 = vrcp.f32 %v810_v39 }
 0x39b   :  { %v2052_v41 = vpop.eup %2051 }
 0x39c   :  { %v823_v42 = vsel %vm150_vm2, %v2052_v41, 0.0  ;;  %v2315_v43 = vpop.eup %2053 }
 0x39d   :  { %824 = vadd.xlane.f32.xlu1 %v823_v42  ;;  %821 = vadd.xlane.f32.xlu0 %v820_v11  ;;  %v826_v44 = vsel %vm150_vm2, %v2315_v43, 0.0 }
 0x3a1   :  { %827 = vadd.xlane.f32.xlu0 %v826_v44 }
 0x3a3   :  { %v2056_v45 = vpop.eup %2055 }
 0x3a4   :  { %v838_v46 = vmul.f32 %v2056_v45, %v2040_v2 }
 0x3a6   :  { %1958 = vmatmul.mubr.msk.f32.vlgmr.msra.gmra.mrb[12].mxu1 %vm150_vm2, %v838_v46 }
 0x3a7   :  { %1966 = vmatpush3.msra.mxu1 %v1074_v47  ;;  %1967 = vmatprep.mubr.msk.f32.mxu1 %vm2150_vm1, %v2147_v8 }
 0x3a8   :  { %1975 = vmatprep.subr.mxu1 %v2147_v8 }
 0x3ae   :  { %1377 = vrot.lane.b32.xlu1 %v2228_v16, %s2153_s9 }
 0x3b7   :  { %1301 = vrot.lane.b32.xlu0 %v2224_v15, %s2153_s9 }
 0x3c1   :  { %v807_v48 = vpop.xlane.xlu1 %806 }
 0x3c2   :  { %2057 = vrcp.f32 %v807_v48 }
 0x3c5   :  { %v1226_v51 = vpop.permute.xlu1 %1225 }
 0x3cc   :  { %v2058_v49 = vpop.eup %2057 }
 0x3cd   :  { %v837_v50 = vmul.f32 %v2058_v49, %v2295_v7 }
 0x3cf   :  { %1953 = vmatmul.mubr.msk.f32.vlgmr.msra.gmra.mrb[6].mxu0 %vm150_vm2, %v837_v50 }
 0x3d0   :  { %1961 = vmatpush3.msra.mxu0 %v998_v31  ;;  %1962 = vmatprep.mubr.msk.f32.mxu0 %vm2150_vm1, %v2147_v8 }
 0x3d1   :  { %1970 = vmatprep.subr.mxu0 %v2147_v8 }
 0x3f5   :  { %v816_v52 = vpop.xlane.xlu0 %815 }
 0x3f6   :  { %2059 = vrcp.f32 %v816_v52 }
 0x3f9   :  { %v813_v16 = vpop.xlane.xlu1 %812  ;;  %v1150_v57 = vpop.permute.xlu0 %1149 }
 0x3fa   :  { %2061 = vrcp.f32 %v813_v16 }
 0x3fd   :  { %v819_v53 = vpop.xlane.xlu1 %818 }
 0x3fe   :  { %2063 = vrcp.f32 %v819_v53 }
 0x400   :  { %v2060_v15 = vpop.eup %2059 }
 0x401   :  { %v840_v54 = vmul.f32 %v2060_v15, %v2044_v25 }
 0x403   :  { %1968 = vmatmul.mubr.msk.f32.vlgmr.msra.gmra.mrb[14].mxu1 %vm150_vm2, %v840_v54 }
 0x404   :  { %v2062_v55 = vpop.eup %2061  ;;  %1976 = vmatpush3.msra.mxu1 %v1226_v51  ;;  %1977 = vmatprep.mubr.msk.f32.mxu1 %vm2150_vm1, %v2147_v8 }
 0x405   :  { %v839_v56 = vmul.f32 %v2062_v55, %v2046_v13  ;;  %1985 = vmatprep.subr.mxu1 %v2147_v8 }
 0x407   :  { %1963 = vmatmul.mubr.msk.f32.vlgmr.msra.gmra.mrb[8].mxu0 %vm150_vm2, %v839_v56 }
 0x408   :  { %v2064_v58 = vpop.eup %2063  ;;  %1971 = vmatpush3.msra.mxu0 %v1150_v57  ;;  %1972 = vmatprep.mubr.msk.f32.mxu0 %vm2150_vm1, %v2147_v8 }
 0x409   :  { %v841_v59 = vmul.f32 %v2064_v58, %v2304_v29  ;;  %1980 = vmatprep.subr.mxu0 %v2147_v8 }
 0x40b   :  { %1973 = vmatmul.mubr.msk.f32.vlgmr.msra.gmra.mrb[10].mxu0 %vm150_vm2, %v841_v59 }
 0x40c   :  { %1982 = vmatprep.mubr.msk.f32.mxu0 %vm2150_vm1, %v2147_v8 }
 0x42a   :  { %v825_v60 = vpop.xlane.xlu1 %824  ;;  %v822_v61 = vpop.xlane.xlu0 %821 }
 0x42b   :  { %2065 = vrcp.f32 %v825_v60 }
 0x42c   :  { %2067 = vrcp.f32 %v822_v61 }
 0x42e   :  { %v828_v62 = vpop.xlane.xlu0 %827  ;;  %v1378_v5 = vpop.permute.xlu1 %1377 }
 0x42f   :  { %2069 = vrcp.f32 %v828_v62 }
 0x432   :  { %v1302_v0 = vpop.permute.xlu0 %1301 }
 0x433   :  { %1981 = vmatpush3.msra.mxu0 %v1302_v0 }
 0x434   :  { %1990 = vmatprep.subr.mxu0 %v1458_v63 }
 0x435   :  { %v2066_v1 = vpop.eup %2065 }
 0x436   :  { %v2068_v2 = vpop.eup %2067  ;;  %v843_v3 = vmul.f32 %v2066_v1, %v2052_v41 }
 0x437   :  { %v842_v4 = vmul.f32 %v2068_v2, %v2310_v40 }
 0x438   :  { %1983 = vmatmul.mubr.msk.f32.vlgmr.msra.gmra.mrb[12].mxu0 %vm150_vm2, %v843_v3 }
 0x439   :  { %1978 = vmatmul.mubr.msk.f32.vlgmr.msra.gmra.mrb[16].mxu1 %vm150_vm2, %v842_v4  ;;  %1991 = vmatpush3.msra.mxu0 %v1458_v63  ;;  %v2070_v6 = vpop.eup %2069 }
 0x43a   :  { %1986 = vmatpush3.msra.mxu1 %v1378_v5  ;;  %1987 = vmatprep.mubr.msk.f32.mxu1 %vm2150_vm1, %v2147_v8  ;;  %v844_v7 = vmul.f32 %v2070_v6, %v2315_v43 }
 0x43b   :  { %1995 = vmatprep.subr.mxu0 %v1542_v9 }
 0x43d   :  { %1988 = vmatmul.mubr.msk.f32.vlgmr.msra.gmra.mrb[18].mxu1 %vm150_vm2, %v844_v7 }
 0x479   :  { %v993_v10 = vpop.f32.mrb[12].mxu1 }
 0x47a   :  { %v1959_v12 = vpop.f32.mrb[13].mxu1 }
 0x4a2   :  { %v917_v17 = vpop.f32.mrb[6].mxu0 }
 0x4a3   :  { %v1954_v18 = vpop.f32.mrb[7].mxu0  ;;  %1992 = vmatprep.mubr.msk.f32.mxu0 %vm150_vm2, %v917_v17 }
 0x4a4   :  { %1993 = vmatmul.mubr.msk.f32.vlgmr.msra.gmra.mrb[14].mxu0 %vm150_vm2, %v993_v10 }
 0x4a5   :  { %1996 = vmatpush3.msra.mxu0 %v1542_v9 }
 0x4a6   :  { %2000 = vmatprep.subr.mxu0 %v1626_v19 }
 0x4d6   :  { %v1145_v20 = vpop.f32.mrb[14].mxu1 }
 0x4d7   :  { %v1969_v14 = vpop.f32.mrb[15].mxu1 }
 0x4da   :  { %v1069_v8 = vpop.f32.mrb[8].mxu0 }
 0x4db   :  { %v1964_v21 = vpop.f32.mrb[9].mxu0  ;;  %1997 = vmatprep.mubr.msk.f32.mxu0 %vm150_vm2, %v1069_v8 }
 0x4dc   :  { %1998 = vmatmul.mubr.msk.f32.vlgmr.msra.gmra.mrb[14].mxu0 %vm150_vm2, %v1145_v20 }
 0x4dd   :  { %2001 = vmatpush3.msra.mxu0 %v1626_v19 }
 0x4de   :  { %v1221_v23 = vpop.f32.mrb[10].mxu0  ;;  %2005 = vmatprep.subr.mxu0 %v1710_v22 }
 0x4df   :  { %v1974_v24 = vpop.f32.mrb[11].mxu0  ;;  %2002 = vmatprep.mubr.msk.f32.mxu0 %vm150_vm2, %v1221_v23 }
 0x50b   :  { %v1373_v25 = vpop.f32.mrb[12].mxu0 }
 0x50c   :  { %v1297_v26 = vpop.f32.mrb[16].mxu1  ;;  %v1984_v27 = vpop.f32.mrb[13].mxu0 }
 0x50d   :  { %v1979_v13 = vpop.f32.mrb[17].mxu1  ;;  %2003 = vmatmul.mubr.msk.f32.vlgmr.msra.gmra.mrb[14].mxu0 %vm150_vm2, %v1297_v26 }
 0x50e   :  { %2006 = vmatpush3.msra.mxu0 %v1710_v22  ;;  %2007 = vmatprep.mubr.msk.f32.mxu0 %vm150_vm2, %v1373_v25 }
 0x510   :  { %v1449_v28 = vpop.f32.mrb[18].mxu1 }
 0x511   :  { %v1989_v29 = vpop.f32.mrb[19].mxu1 }
 0x515   :  { %2008 = vmatmul.mubr.msk.f32.vlgmr.msra.gmra.mrb[14].mxu0 %vm150_vm2, %v1449_v28 }
 0x5e8   :  { %v2009_v31 = vpop.f32.mrb[14].mxu0 }
 0x5e9   :  { %v2018_v32 = vadd.f32 %v2009_v31, %v1840_v30  ;;  %v1783_v33 = vpop.f32.mrb[15].mxu0 }
 0x5ea   :  { %v2019_v34 = vadd.f32 %v1840_v30, %v1783_v33 }
 0x5eb   :  { %1795 = vst [vmem:[#allocation7 + $0x8] sm:$0xff] %v2018_v32 }
 0x5ec   :  { %1794 = vst [vmem:[#allocation7] sm:$0xff] %v2019_v34 }
 0x5ed   :  { %2126 = shalt.err (!%p2123_p6)
}
 0x5ee   :  { %s2127_s15 = scalar_lea.hbm %s2376_s2, 256 }
 0x5ef   :  { %p2128_p7 = scmp.ne.s32.totalorder %s2376_s2, %s2127_s15  ;;  %p2131_p8 = scmp.lt.u32.totalorder %s2127_s15, %s2376_s2 }
 0x5f1   :  { %p2133_p9 = pnand %p2131_p8, %p2128_p7 }
 0x5f3   :  { %2136 = shalt.err (!%p2133_p9)
}
 0x5f4   :  { %1807 = dma.vmem_to_hbm [thread:$0]  %s1802_s11, 256, %s2376_s2, [#allocation4], %s2144_s19, %s2144_s19, %s2145_s20  }
 0x5f5   :  { %2141 = dma.done.wait [#allocation4], 256  }
 0x5f6   :  { %2142 = vsyncadd [#allocation4], 4294967040 }
 0x5f7   :  { %1811 = vsyncpa [#allocation3], 1 }
 0x5f8   :  { %1812 = vsyncpa [#allocation6], 1 }
 0x5f9   :  { %1813 = vsyncpa [#allocation4], 1 }

</bundles_post_ra>
